<compile_context>
chip_gen: v7x
topology: tpu7x:2x2x1
jax: 0.10.0
libtpu: 0.0.40
codegen_flags: <defaults>
</compile_context>

<pallas_src>
import functools

import jax
import jax.numpy as jnp
from jax.experimental import pallas as pl
from jax.experimental.pallas import tpu as pltpu

NUM_LAYERS = 9  # 4 encoder linears + 5 decoder linears


def _round_up(x, m):
    return ((x + m - 1) // m) * m


def _mlp_kernel(x_ref, *rest):
    """Full encoder+decoder chain on one (D, TILE_L) feature-major tile.

    Refs: x (D, TILE_L), then 9 x (Wt (out,in), b (out,1)) pairs (already f32),
    then enc_out (latent, TILE_L), dec_out (D, TILE_L).
    """
    param_refs = rest[: 2 * NUM_LAYERS]
    enc_ref = rest[2 * NUM_LAYERS]
    dec_ref = rest[2 * NUM_LAYERS + 1]

    # Features on sublanes, L-tile on lanes.  Single cast per tile.
    h = x_ref[...].astype(jnp.float32)

    # Encoder: 4 Linear layers, each followed by CustomTanh (== tanh * 1).
    for li in range(4):
        wt = param_refs[2 * li][...]        # (out, in), f32 (cast hoisted)
        b = param_refs[2 * li + 1][...]     # (out, 1)
        h = jnp.tanh(jnp.dot(wt, h, preferred_element_type=jnp.float32) + b)
    enc_ref[...] = h.astype(enc_ref.dtype)

    # Decoder: 5 Linear layers, tanh after all but the last.
    for li in range(4, NUM_LAYERS):
        wt = param_refs[2 * li][...]
        b = param_refs[2 * li + 1][...]
        h = jnp.dot(wt, h, preferred_element_type=jnp.float32) + b
        if li < NUM_LAYERS - 1:
            h = jnp.tanh(h)
    dec_ref[...] = h.astype(dec_ref.dtype)


@functools.partial(jax.jit, static_argnames=("tile_l",))
def pca_autoencoder_forward(x1, params, *, tile_l=512):
    """x1: (B, input_dim, L).  params: list of (W (in,out), b (1,out)).

    Returns (encoded1 (B, latent, L), decoded (B, input_dim, L)) exactly as the
    PyTorch module does.
    """
    B, D, L = x1.shape
    latent_dim = params[3][0].shape[1]  # out-dim of 4th encoder linear

    # Large, 128-aligned L tile; clamp for small L and pad with zeros.
    tile_l = max(128, _round_up(tile_l, 128))
    tile = min(tile_l, _round_up(L, 128))
    L_pad = _round_up(L, tile)
    x = x1 if L_pad == L else jnp.pad(x1, ((0, 0), (0, 0), (0, L_pad - L)))

    # Transpose weights to (out, in), biases to (out, 1); cast to f32 once
    # (hoisted out of the kernel body).
    flat_params = []
    for w, b in params:
        flat_params.append(jnp.asarray(w, jnp.float32).T)
        flat_params.append(jnp.asarray(b, jnp.float32).reshape(-1, 1))

    grid = (B, L_pad // tile)

    # x tile: batch squeezed, (D, tile) per step; params resident full blocks.
    in_specs = [pl.BlockSpec((None, D, tile), lambda bi, li: (bi, 0, li))]
    in_specs += [
        pl.BlockSpec(p.shape, lambda bi, li: (0, 0)) for p in flat_params
    ]
    out_specs = [
        pl.BlockSpec((None, latent_dim, tile), lambda bi, li: (bi, 0, li)),
        pl.BlockSpec((None, D, tile), lambda bi, li: (bi, 0, li)),
    ]
    out_shape = [
        jax.ShapeDtypeStruct((B, latent_dim, L_pad), x1.dtype),
        jax.ShapeDtypeStruct((B, D, L_pad), x1.dtype),
    ]

    encoded1, decoded = pl.pallas_call(
        _mlp_kernel,
        out_shape=out_shape,
        grid_spec=pltpu.PrefetchScalarGridSpec(
            num_scalar_prefetch=0,
            grid=grid,
            in_specs=in_specs,
            out_specs=out_specs,
        ),
        compiler_params=pltpu.CompilerParams(
            dimension_semantics=("parallel", "parallel")
        ),
    )(x, *flat_params)

    if L_pad != L:
        encoded1 = encoded1[:, :, :L]
        decoded = decoded[:, :, :L]
    return encoded1, decoded


def init_params(key, input_dim, hidden_size, latent_dim, dtype=jnp.float32):
    """Deterministic init mirroring nn.Linear default (uniform ±1/sqrt(fan_in)).

    Weights stored as (in, out), biases as (1, out) (i.e. y = x @ W + b, equal
    to PyTorch's x @ weight.T + bias).  The wrapper re-orients them for the
    feature-major kernel.
    """
    enc_dims = [input_dim, hidden_size // 2, hidden_size // 4,
                hidden_size // 6, latent_dim]
    dec_dims = [latent_dim, hidden_size // 6, hidden_size // 4,
                hidden_size // 2, hidden_size, input_dim]
    dims = list(zip(enc_dims[:-1], enc_dims[1:])) + \
           list(zip(dec_dims[:-1], dec_dims[1:]))

    params = []
    for (fan_in, fan_out) in dims:
        key, kw, kb = jax.random.split(key, 3)
        bound = 1.0 / jnp.sqrt(jnp.float32(fan_in))
        w = jax.random.uniform(kw, (fan_in, fan_out), dtype,
                               minval=-bound, maxval=bound)
        b = jax.random.uniform(kb, (1, fan_out), dtype,
                               minval=-bound, maxval=bound)
        params.append((w, b))
    return params


def _reference_forward(x1, params):
    """Pure-JAX reference of the PyTorch forward (for a sanity check)."""
    x = jnp.transpose(x1, (0, 2, 1))
    h = x
    for (w, b) in params[:4]:
        h = jnp.tanh(h @ w + b)
    enc = h
    for li, (w, b) in enumerate(params[4:]):
        h = h @ w + b
        if li < 4:
            h = jnp.tanh(h)
    return jnp.transpose(enc, (0, 2, 1)), jnp.transpose(h, (0, 2, 1))


if __name__ == "__main__":
    # Small shapes consistent with the module's forward:
    # x1: (batch, input_dim, seq) -> PyTorch permutes to (batch, seq, input_dim)
    batch, input_dim, seq = 2, 16, 8
    hidden_size, latent_dim = 32, 4

    key = jax.random.PRNGKey(0)
    key, kx = jax.random.split(key)
    x1 = jax.random.normal(kx, (batch, input_dim, seq), jnp.float32)
    params = init_params(key, input_dim, hidden_size, latent_dim)

    encoded1, decoded = pca_autoencoder_forward(x1, params)
    jax.block_until_ready((encoded1, decoded))

    # Lightweight correctness check against the pure-JAX reference.
    ref_enc, ref_dec = _reference_forward(x1, params)
    assert encoded1.shape == (batch, latent_dim, seq)
    assert decoded.shape == (batch, input_dim, seq)
    assert jnp.allclose(encoded1, ref_enc, atol=1e-4, rtol=1e-4)
    assert jnp.allclose(decoded, ref_dec, atol=1e-4, rtol=1e-4)

    print("KERNEL_OK")
</pallas_src>

<mosaic_0001>
module attributes {stable_mosaic.version = 11 : i64} {
  func.func @_mlp_kernel(%arg0: i32, %arg1: i32, %arg2: memref<1x16x128xf32, #tpu.memory_space<vmem>>, %arg3: memref<16x16xf32, #tpu.memory_space<vmem>>, %arg4: memref<16x1xf32, #tpu.memory_space<vmem>>, %arg5: memref<8x16xf32, #tpu.memory_space<vmem>>, %arg6: memref<8x1xf32, #tpu.memory_space<vmem>>, %arg7: memref<5x8xf32, #tpu.memory_space<vmem>>, %arg8: memref<5x1xf32, #tpu.memory_space<vmem>>, %arg9: memref<4x5xf32, #tpu.memory_space<vmem>>, %arg10: memref<4x1xf32, #tpu.memory_space<vmem>>, %arg11: memref<5x4xf32, #tpu.memory_space<vmem>>, %arg12: memref<5x1xf32, #tpu.memory_space<vmem>>, %arg13: memref<8x5xf32, #tpu.memory_space<vmem>>, %arg14: memref<8x1xf32, #tpu.memory_space<vmem>>, %arg15: memref<16x8xf32, #tpu.memory_space<vmem>>, %arg16: memref<16x1xf32, #tpu.memory_space<vmem>>, %arg17: memref<32x16xf32, #tpu.memory_space<vmem>>, %arg18: memref<32x1xf32, #tpu.memory_space<vmem>>, %arg19: memref<16x32xf32, #tpu.memory_space<vmem>>, %arg20: memref<16x1xf32, #tpu.memory_space<vmem>>, %arg21: memref<1x4x128xf32, #tpu.memory_space<vmem>>, %arg22: memref<1x16x128xf32, #tpu.memory_space<vmem>>) attributes {dimension_semantics = [#tpu.dimension_semantics<parallel>, #tpu.dimension_semantics<parallel>], iteration_bounds = array<i64: 2, 1>, scalar_prefetch = 0 : i64, scratch_operands = 0 : i64, tpu.core_type = #tpu.core_type<tc>, window_params = [{transform_indices = @transform_0, window_bounds = array<i64: 1, 16, 128>}, {pipeline_mode = #tpu.pipeline_mode<synchronous>, transform_indices = @transform_1, window_bounds = array<i64: 16, 16>}, {pipeline_mode = #tpu.pipeline_mode<synchronous>, transform_indices = @transform_2, window_bounds = array<i64: 16, 1>}, {pipeline_mode = #tpu.pipeline_mode<synchronous>, transform_indices = @transform_3, window_bounds = array<i64: 8, 16>}, {pipeline_mode = #tpu.pipeline_mode<synchronous>, transform_indices = @transform_4, window_bounds = array<i64: 8, 1>}, {pipeline_mode = #tpu.pipeline_mode<synchronous>, transform_indices = @transform_5, window_bounds = array<i64: 5, 8>}, {pipeline_mode = #tpu.pipeline_mode<synchronous>, transform_indices = @transform_6, window_bounds = array<i64: 5, 1>}, {pipeline_mode = #tpu.pipeline_mode<synchronous>, transform_indices = @transform_7, window_bounds = array<i64: 4, 5>}, {pipeline_mode = #tpu.pipeline_mode<synchronous>, transform_indices = @transform_8, window_bounds = array<i64: 4, 1>}, {pipeline_mode = #tpu.pipeline_mode<synchronous>, transform_indices = @transform_9, window_bounds = array<i64: 5, 4>}, {pipeline_mode = #tpu.pipeline_mode<synchronous>, transform_indices = @transform_10, window_bounds = array<i64: 5, 1>}, {pipeline_mode = #tpu.pipeline_mode<synchronous>, transform_indices = @transform_11, window_bounds = array<i64: 8, 5>}, {pipeline_mode = #tpu.pipeline_mode<synchronous>, transform_indices = @transform_12, window_bounds = array<i64: 8, 1>}, {pipeline_mode = #tpu.pipeline_mode<synchronous>, transform_indices = @transform_13, window_bounds = array<i64: 16, 8>}, {pipeline_mode = #tpu.pipeline_mode<synchronous>, transform_indices = @transform_14, window_bounds = array<i64: 16, 1>}, {pipeline_mode = #tpu.pipeline_mode<synchronous>, transform_indices = @transform_15, window_bounds = array<i64: 32, 16>}, {pipeline_mode = #tpu.pipeline_mode<synchronous>, transform_indices = @transform_16, window_bounds = array<i64: 32, 1>}, {pipeline_mode = #tpu.pipeline_mode<synchronous>, transform_indices = @transform_17, window_bounds = array<i64: 16, 32>}, {pipeline_mode = #tpu.pipeline_mode<synchronous>, transform_indices = @transform_18, window_bounds = array<i64: 16, 1>}, {transform_indices = @transform_19, window_bounds = array<i64: 1, 4, 128>}, {transform_indices = @transform_20, window_bounds = array<i64: 1, 16, 128>}]} {
    %c0 = arith.constant 0 : index
    %c0_0 = arith.constant 0 : index
    %c0_1 = arith.constant 0 : index
    %0 = vector.load %arg2[%c0, %c0_0, %c0_1] : memref<1x16x128xf32, #tpu.memory_space<vmem>>, vector<1x16x128xf32>
    %1 = vector.shape_cast %0 : vector<1x16x128xf32> to vector<16x128xf32>
    %c0_2 = arith.constant 0 : index
    %c0_3 = arith.constant 0 : index
    %2 = vector.load %arg3[%c0_2, %c0_3] : memref<16x16xf32, #tpu.memory_space<vmem>>, vector<16x16xf32>
    %c0_4 = arith.constant 0 : index
    %c0_5 = arith.constant 0 : index
    %3 = vector.load %arg4[%c0_4, %c0_5] : memref<16x1xf32, #tpu.memory_space<vmem>>, vector<16x1xf32>
    %cst = arith.constant dense<0.000000e+00> : vector<16x128xf32>
    %4 = tpu.matmul %2, %1, %cst {dimension_numbers = #tpu.dot_dimension_numbers<[1], [0], [0], [1], [0, 0, 1, 1], [], []>} : vector<16x16xf32>, vector<16x128xf32>, vector<16x128xf32> -> vector<16x128xf32>
    %5 = vector.broadcast %3 : vector<16x1xf32> to vector<16x128xf32>
    %6 = arith.addf %4, %5 : vector<16x128xf32>
    %7 = math.tanh %6 : vector<16x128xf32>
    %c0_6 = arith.constant 0 : index
    %c0_7 = arith.constant 0 : index
    %8 = vector.load %arg5[%c0_6, %c0_7] : memref<8x16xf32, #tpu.memory_space<vmem>>, vector<8x16xf32>
    %c0_8 = arith.constant 0 : index
    %c0_9 = arith.constant 0 : index
    %9 = vector.load %arg6[%c0_8, %c0_9] : memref<8x1xf32, #tpu.memory_space<vmem>>, vector<8x1xf32>
    %cst_10 = arith.constant dense<0.000000e+00> : vector<8x128xf32>
    %10 = tpu.matmul %8, %7, %cst_10 {dimension_numbers = #tpu.dot_dimension_numbers<[1], [0], [0], [1], [0, 0, 1, 1], [], []>} : vector<8x16xf32>, vector<16x128xf32>, vector<8x128xf32> -> vector<8x128xf32>
    %11 = vector.broadcast %9 : vector<8x1xf32> to vector<8x128xf32>
    %12 = arith.addf %10, %11 : vector<8x128xf32>
    %13 = math.tanh %12 : vector<8x128xf32>
    %c0_11 = arith.constant 0 : index
    %c0_12 = arith.constant 0 : index
    %14 = vector.load %arg7[%c0_11, %c0_12] : memref<5x8xf32, #tpu.memory_space<vmem>>, vector<5x8xf32>
    %c0_13 = arith.constant 0 : index
    %c0_14 = arith.constant 0 : index
    %15 = vector.load %arg8[%c0_13, %c0_14] : memref<5x1xf32, #tpu.memory_space<vmem>>, vector<5x1xf32>
    %cst_15 = arith.constant dense<0.000000e+00> : vector<5x128xf32>
    %16 = tpu.matmul %14, %13, %cst_15 {dimension_numbers = #tpu.dot_dimension_numbers<[1], [0], [0], [1], [0, 0, 1, 1], [], []>} : vector<5x8xf32>, vector<8x128xf32>, vector<5x128xf32> -> vector<5x128xf32>
    %17 = vector.broadcast %15 : vector<5x1xf32> to vector<5x128xf32>
    %18 = arith.addf %16, %17 : vector<5x128xf32>
    %19 = math.tanh %18 : vector<5x128xf32>
    %c0_16 = arith.constant 0 : index
    %c0_17 = arith.constant 0 : index
    %20 = vector.load %arg9[%c0_16, %c0_17] : memref<4x5xf32, #tpu.memory_space<vmem>>, vector<4x5xf32>
    %c0_18 = arith.constant 0 : index
    %c0_19 = arith.constant 0 : index
    %21 = vector.load %arg10[%c0_18, %c0_19] : memref<4x1xf32, #tpu.memory_space<vmem>>, vector<4x1xf32>
    %cst_20 = arith.constant dense<0.000000e+00> : vector<4x128xf32>
    %22 = tpu.matmul %20, %19, %cst_20 {dimension_numbers = #tpu.dot_dimension_numbers<[1], [0], [0], [1], [0, 0, 1, 1], [], []>} : vector<4x5xf32>, vector<5x128xf32>, vector<4x128xf32> -> vector<4x128xf32>
    %23 = vector.broadcast %21 : vector<4x1xf32> to vector<4x128xf32>
    %24 = arith.addf %22, %23 : vector<4x128xf32>
    %25 = math.tanh %24 : vector<4x128xf32>
    %c0_21 = arith.constant 0 : index
    %c0_22 = arith.constant 0 : index
    %c0_23 = arith.constant 0 : index
    %26 = vector.load %arg21[%c0_21, %c0_22, %c0_23] : memref<1x4x128xf32, #tpu.memory_space<vmem>>, vector<1x4x128xf32>
    %27 = vector.shape_cast %26 : vector<1x4x128xf32> to vector<4x128xf32>
    %28 = vector.shape_cast %25 : vector<4x128xf32> to vector<1x4x128xf32>
    tpu.vector_store %arg21[%c0_21, %c0_22, %c0_23], %28 {strides = array<i32>} : memref<1x4x128xf32, #tpu.memory_space<vmem>>, vector<1x4x128xf32>,
    %c0_24 = arith.constant 0 : index
    %c0_25 = arith.constant 0 : index
    %29 = vector.load %arg11[%c0_24, %c0_25] : memref<5x4xf32, #tpu.memory_space<vmem>>, vector<5x4xf32>
    %c0_26 = arith.constant 0 : index
    %c0_27 = arith.constant 0 : index
    %30 = vector.load %arg12[%c0_26, %c0_27] : memref<5x1xf32, #tpu.memory_space<vmem>>, vector<5x1xf32>
    %cst_28 = arith.constant dense<0.000000e+00> : vector<5x128xf32>
    %31 = tpu.matmul %29, %25, %cst_28 {dimension_numbers = #tpu.dot_dimension_numbers<[1], [0], [0], [1], [0, 0, 1, 1], [], []>} : vector<5x4xf32>, vector<4x128xf32>, vector<5x128xf32> -> vector<5x128xf32>
    %32 = vector.broadcast %30 : vector<5x1xf32> to vector<5x128xf32>
    %33 = arith.addf %31, %32 : vector<5x128xf32>
    %34 = math.tanh %33 : vector<5x128xf32>
    %c0_29 = arith.constant 0 : index
    %c0_30 = arith.constant 0 : index
    %35 = vector.load %arg13[%c0_29, %c0_30] : memref<8x5xf32, #tpu.memory_space<vmem>>, vector<8x5xf32>
    %c0_31 = arith.constant 0 : index
    %c0_32 = arith.constant 0 : index
    %36 = vector.load %arg14[%c0_31, %c0_32] : memref<8x1xf32, #tpu.memory_space<vmem>>, vector<8x1xf32>
    %cst_33 = arith.constant dense<0.000000e+00> : vector<8x128xf32>
    %37 = tpu.matmul %35, %34, %cst_33 {dimension_numbers = #tpu.dot_dimension_numbers<[1], [0], [0], [1], [0, 0, 1, 1], [], []>} : vector<8x5xf32>, vector<5x128xf32>, vector<8x128xf32> -> vector<8x128xf32>
    %38 = vector.broadcast %36 : vector<8x1xf32> to vector<8x128xf32>
    %39 = arith.addf %37, %38 : vector<8x128xf32>
    %40 = math.tanh %39 : vector<8x128xf32>
    %c0_34 = arith.constant 0 : index
    %c0_35 = arith.constant 0 : index
    %41 = vector.load %arg15[%c0_34, %c0_35] : memref<16x8xf32, #tpu.memory_space<vmem>>, vector<16x8xf32>
    %c0_36 = arith.constant 0 : index
    %c0_37 = arith.constant 0 : index
    %42 = vector.load %arg16[%c0_36, %c0_37] : memref<16x1xf32, #tpu.memory_space<vmem>>, vector<16x1xf32>
    %cst_38 = arith.constant dense<0.000000e+00> : vector<16x128xf32>
    %43 = tpu.matmul %41, %40, %cst_38 {dimension_numbers = #tpu.dot_dimension_numbers<[1], [0], [0], [1], [0, 0, 1, 1], [], []>} : vector<16x8xf32>, vector<8x128xf32>, vector<16x128xf32> -> vector<16x128xf32>
    %44 = vector.broadcast %42 : vector<16x1xf32> to vector<16x128xf32>
    %45 = arith.addf %43, %44 : vector<16x128xf32>
    %46 = math.tanh %45 : vector<16x128xf32>
    %c0_39 = arith.constant 0 : index
    %c0_40 = arith.constant 0 : index
    %47 = vector.load %arg17[%c0_39, %c0_40] : memref<32x16xf32, #tpu.memory_space<vmem>>, vector<32x16xf32>
    %c0_41 = arith.constant 0 : index
    %c0_42 = arith.constant 0 : index
    %48 = vector.load %arg18[%c0_41, %c0_42] : memref<32x1xf32, #tpu.memory_space<vmem>>, vector<32x1xf32>
    %cst_43 = arith.constant dense<0.000000e+00> : vector<32x128xf32>
    %49 = tpu.matmul %47, %46, %cst_43 {dimension_numbers = #tpu.dot_dimension_numbers<[1], [0], [0], [1], [0, 0, 1, 1], [], []>} : vector<32x16xf32>, vector<16x128xf32>, vector<32x128xf32> -> vector<32x128xf32>
    %50 = vector.broadcast %48 : vector<32x1xf32> to vector<32x128xf32>
    %51 = arith.addf %49, %50 : vector<32x128xf32>
    %52 = math.tanh %51 : vector<32x128xf32>
    %c0_44 = arith.constant 0 : index
    %c0_45 = arith.constant 0 : index
    %53 = vector.load %arg19[%c0_44, %c0_45] : memref<16x32xf32, #tpu.memory_space<vmem>>, vector<16x32xf32>
    %c0_46 = arith.constant 0 : index
    %c0_47 = arith.constant 0 : index
    %54 = vector.load %arg20[%c0_46, %c0_47] : memref<16x1xf32, #tpu.memory_space<vmem>>, vector<16x1xf32>
    %cst_48 = arith.constant dense<0.000000e+00> : vector<16x128xf32>
    %55 = tpu.matmul %53, %52, %cst_48 {dimension_numbers = #tpu.dot_dimension_numbers<[1], [0], [0], [1], [0, 0, 1, 1], [], []>} : vector<16x32xf32>, vector<32x128xf32>, vector<16x128xf32> -> vector<16x128xf32>
    %56 = vector.broadcast %54 : vector<16x1xf32> to vector<16x128xf32>
    %57 = arith.addf %55, %56 : vector<16x128xf32>
    %c0_49 = arith.constant 0 : index
    %c0_50 = arith.constant 0 : index
    %c0_51 = arith.constant 0 : index
    %58 = vector.load %arg22[%c0_49, %c0_50, %c0_51] : memref<1x16x128xf32, #tpu.memory_space<vmem>>, vector<1x16x128xf32>
    %59 = vector.shape_cast %58 : vector<1x16x128xf32> to vector<16x128xf32>
    %60 = vector.shape_cast %57 : vector<16x128xf32> to vector<1x16x128xf32>
    tpu.vector_store %arg22[%c0_49, %c0_50, %c0_51], %60 {strides = array<i32>} : memref<1x16x128xf32, #tpu.memory_space<vmem>>, vector<1x16x128xf32>,
    return
  }
  func.func @transform_0(%arg0: i32, %arg1: i32) -> (i32, i32, i32) {
    %c0_i32 = arith.constant 0 : i32
    %c0_i32_0 = arith.constant 0 : i32
    return %arg0, %c0_i32, %arg1 : i32, i32, i32
  }
  func.func @transform_1(%arg0: i32, %arg1: i32) -> (i32, i32) {
    %c0_i32 = arith.constant 0 : i32
    %c0_i32_0 = arith.constant 0 : i32
    %c0_i32_1 = arith.constant 0 : i32
    return %c0_i32, %c0_i32_0 : i32, i32
  }
  func.func @transform_2(%arg0: i32, %arg1: i32) -> (i32, i32) {
    %c0_i32 = arith.constant 0 : i32
    %c0_i32_0 = arith.constant 0 : i32
    %c0_i32_1 = arith.constant 0 : i32
    return %c0_i32, %c0_i32_0 : i32, i32
  }
  func.func @transform_3(%arg0: i32, %arg1: i32) -> (i32, i32) {
    %c0_i32 = arith.constant 0 : i32
    %c0_i32_0 = arith.constant 0 : i32
    %c0_i32_1 = arith.constant 0 : i32
    return %c0_i32, %c0_i32_0 : i32, i32
  }
  func.func @transform_4(%arg0: i32, %arg1: i32) -> (i32, i32) {
    %c0_i32 = arith.constant 0 : i32
    %c0_i32_0 = arith.constant 0 : i32
    %c0_i32_1 = arith.constant 0 : i32
    return %c0_i32, %c0_i32_0 : i32, i32
  }
  func.func @transform_5(%arg0: i32, %arg1: i32) -> (i32, i32) {
    %c0_i32 = arith.constant 0 : i32
    %c0_i32_0 = arith.constant 0 : i32
    %c0_i32_1 = arith.constant 0 : i32
    return %c0_i32, %c0_i32_0 : i32, i32
  }
  func.func @transform_6(%arg0: i32, %arg1: i32) -> (i32, i32) {
    %c0_i32 = arith.constant 0 : i32
    %c0_i32_0 = arith.constant 0 : i32
    %c0_i32_1 = arith.constant 0 : i32
    return %c0_i32, %c0_i32_0 : i32, i32
  }
  func.func @transform_7(%arg0: i32, %arg1: i32) -> (i32, i32) {
    %c0_i32 = arith.constant 0 : i32
    %c0_i32_0 = arith.constant 0 : i32
    %c0_i32_1 = arith.constant 0 : i32
    return %c0_i32, %c0_i32_0 : i32, i32
  }
  func.func @transform_8(%arg0: i32, %arg1: i32) -> (i32, i32) {
    %c0_i32 = arith.constant 0 : i32
    %c0_i32_0 = arith.constant 0 : i32
    %c0_i32_1 = arith.constant 0 : i32
    return %c0_i32, %c0_i32_0 : i32, i32
  }
  func.func @transform_9(%arg0: i32, %arg1: i32) -> (i32, i32) {
    %c0_i32 = arith.constant 0 : i32
    %c0_i32_0 = arith.constant 0 : i32
    %c0_i32_1 = arith.constant 0 : i32
    return %c0_i32, %c0_i32_0 : i32, i32
  }
  func.func @transform_10(%arg0: i32, %arg1: i32) -> (i32, i32) {
    %c0_i32 = arith.constant 0 : i32
    %c0_i32_0 = arith.constant 0 : i32
    %c0_i32_1 = arith.constant 0 : i32
    return %c0_i32, %c0_i32_0 : i32, i32
  }
  func.func @transform_11(%arg0: i32, %arg1: i32) -> (i32, i32) {
    %c0_i32 = arith.constant 0 : i32
    %c0_i32_0 = arith.constant 0 : i32
    %c0_i32_1 = arith.constant 0 : i32
    return %c0_i32, %c0_i32_0 : i32, i32
  }
  func.func @transform_12(%arg0: i32, %arg1: i32) -> (i32, i32) {
    %c0_i32 = arith.constant 0 : i32
    %c0_i32_0 = arith.constant 0 : i32
    %c0_i32_1 = arith.constant 0 : i32
    return %c0_i32, %c0_i32_0 : i32, i32
  }
  func.func @transform_13(%arg0: i32, %arg1: i32) -> (i32, i32) {
    %c0_i32 = arith.constant 0 : i32
    %c0_i32_0 = arith.constant 0 : i32
    %c0_i32_1 = arith.constant 0 : i32
    return %c0_i32, %c0_i32_0 : i32, i32
  }
  func.func @transform_14(%arg0: i32, %arg1: i32) -> (i32, i32) {
    %c0_i32 = arith.constant 0 : i32
    %c0_i32_0 = arith.constant 0 : i32
    %c0_i32_1 = arith.constant 0 : i32
    return %c0_i32, %c0_i32_0 : i32, i32
  }
  func.func @transform_15(%arg0: i32, %arg1: i32) -> (i32, i32) {
    %c0_i32 = arith.constant 0 : i32
    %c0_i32_0 = arith.constant 0 : i32
    %c0_i32_1 = arith.constant 0 : i32
    return %c0_i32, %c0_i32_0 : i32, i32
  }
  func.func @transform_16(%arg0: i32, %arg1: i32) -> (i32, i32) {
    %c0_i32 = arith.constant 0 : i32
    %c0_i32_0 = arith.constant 0 : i32
    %c0_i32_1 = arith.constant 0 : i32
    return %c0_i32, %c0_i32_0 : i32, i32
  }
  func.func @transform_17(%arg0: i32, %arg1: i32) -> (i32, i32) {
    %c0_i32 = arith.constant 0 : i32
    %c0_i32_0 = arith.constant 0 : i32
    %c0_i32_1 = arith.constant 0 : i32
    return %c0_i32, %c0_i32_0 : i32, i32
  }
  func.func @transform_18(%arg0: i32, %arg1: i32) -> (i32, i32) {
    %c0_i32 = arith.constant 0 : i32
    %c0_i32_0 = arith.constant 0 : i32
    %c0_i32_1 = arith.constant 0 : i32
    return %c0_i32, %c0_i32_0 : i32, i32
  }
  func.func @transform_19(%arg0: i32, %arg1: i32) -> (i32, i32, i32) {
    %c0_i32 = arith.constant 0 : i32
    %c0_i32_0 = arith.constant 0 : i32
    return %arg0, %c0_i32, %arg1 : i32, i32, i32
  }
  func.func @transform_20(%arg0: i32, %arg1: i32) -> (i32, i32, i32) {
    %c0_i32 = arith.constant 0 : i32
    %c0_i32_0 = arith.constant 0 : i32
    return %arg0, %c0_i32, %arg1 : i32, i32, i32
  }
}

</mosaic_0001>

<bundles_post_ra>
// kernel: pca_autoencoder_forward.1
= control target key start
LH: loop header
LB: loop body
LE: loop exit
PB: predicated region body
PF: predicated region fallthrough
CT: control target
= control target key end

     0   :  { %s2312_s0 = inlined_call_operand.vmem [shape: f32[2,16,128], index: 0, kind: input, shape index: {}]   ;;  %s2313_s1 = inlined_call_operand.vmem [shape: f32[16,16], index: 1, kind: input, shape index: {}]   ;;  %s2314_s2 = inlined_call_operand.vmem [shape: f32[16,1], index: 2, kind: input, shape index: {}]   ;;  %s2315_s3 = inlined_call_operand.vmem [shape: f32[8,16], index: 3, kind: input, shape index: {}]   ;;  %s2316_s4 = inlined_call_operand.vmem [shape: f32[8,1], index: 4, kind: input, shape index: {}]   ;;  %s2317_s5 = inlined_call_operand.vmem [shape: f32[5,8], index: 5, kind: input, shape index: {}]   ;;  %s2318_s6 = inlined_call_operand.vmem [shape: f32[5,1], index: 6, kind: input, shape index: {}]   ;;  %s2319_s7 = inlined_call_operand.vmem [shape: f32[4,5], index: 7, kind: input, shape index: {}]   ;;  %s2320_s8 = inlined_call_operand.vmem [shape: f32[4,1], index: 8, kind: input, shape index: {}]   ;;  %s2321_s9 = inlined_call_operand.vmem [shape: f32[5,4], index: 9, kind: input, shape index: {}]   ;;  %s2322_s10 = inlined_call_operand.vmem [shape: f32[5,1], index: 10, kind: input, shape index: {}]   ;;  %s2323_s11 = inlined_call_operand.vmem [shape: f32[8,5], index: 11, kind: input, shape index: {}]   ;;  %s2324_s12 = inlined_call_operand.vmem [shape: f32[8,1], index: 12, kind: input, shape index: {}]   ;;  %s2325_s13 = inlined_call_operand.vmem [shape: f32[16,8], index: 13, kind: input, shape index: {}]   ;;  %s2326_s14 = inlined_call_operand.vmem [shape: f32[16,1], index: 14, kind: input, shape index: {}]   ;;  %s2327_s15 = inlined_call_operand.vmem [shape: f32[32,16], index: 15, kind: input, shape index: {}]   ;;  %s2328_s16 = inlined_call_operand.vmem [shape: f32[32,1], index: 16, kind: input, shape index: {}]   ;;  %s2329_s17 = inlined_call_operand.vmem [shape: f32[16,32], index: 17, kind: input, shape index: {}]   ;;  %s2330_s18 = inlined_call_operand.vmem [shape: f32[16,1], index: 18, kind: input, shape index: {}]   ;;  %s2331_s19 = inlined_call_operand.hbm [shape: f32[2,4,128], index: 19, kind: output, shape index: {0}]   ;;  %s2332_s20 = inlined_call_operand.vmem [shape: f32[2,16,128], index: 20, kind: output, shape index: {1}]  }
   0x1   :  { %2344 = sst [smem:[#allocation12_spill]] %s2312_s0 }
   0x2   :  { %2345 = sst [smem:[#allocation13_spill]] %s2313_s1 }
   0x3   :  { %2346 = sst [smem:[#allocation14_spill]] %s2314_s2 }
   0x4   :  { %2347 = sst [smem:[#allocation15_spill]] %s2315_s3 }
   0x5   :  { %2348 = sst [smem:[#allocation16_spill]] %s2316_s4 }
   0x6   :  { %2349 = sst [smem:[#allocation17_spill]] %s2317_s5 }
   0x7   :  { %2350 = sst [smem:[#allocation18_spill]] %s2318_s6 }
   0x8   :  { %2351 = sst [smem:[#allocation19_spill]] %s2319_s7 }
   0x9   :  { %2352 = sst [smem:[#allocation20_spill]] %s2331_s19 }
   0xa   :  { %2353 = sst [smem:[#allocation21_spill]] %s2332_s20 }
   0xb   :  { %26 = vsyncpa [#allocation3], 0 }
   0xc   :  { %28 = vsyncpa [#allocation3 + $0x1], 0  ;;  %s2074_s1 = smov 0   ;;  %s2076_s22 = smov 0  }
   0xd   :  { %s2078_s23 = smov 0   ;;  %s2080_s24 = smov 0  }
   0xe   :  { %s2082_s2 = smov 0   ;;  %s2084_s25 = smov 0  }
   0xf LB: > { %2354 = sst [smem:[#allocation5_spill]] %s1942_s1  ;;  %s1654_s3 = sadd.s32 4294967295, %s1962_s25   ;;  %s1962_s25 = sphi %s2084_s25, %s34_s25   ;;  %s1958_s2 = sphi %s2082_s2, %s2381_s2   ;;  %s1954_s24 = sphi %s2080_s24, %s2380_s24   ;;  %s1950_s23 = sphi %s2078_s23, %s2379_s23   ;;  %s1946_s22 = sphi %s2076_s22, %s2383_s22   ;;  %s1942_s1 = sphi %s2074_s1, %s2382_s1  }
  0x10   : > { %2355 = sst [smem:[#allocation6_spill]] %s1950_s23  ;;  %s1655_s26 = sadd.s32 4294967294, %s1962_s25  }
  0x11   : > { %2356 = sst [smem:[#allocation7_spill]] %s1958_s2  ;;  %s46_s27 = sadd.s32 1, %s1958_s2 }
  0x12   : > { %2357 = sst [smem:[#allocation8_spill]] %s1962_s25  ;;  %s461_s28 = sadd.s32 1, %s1950_s23 }
  0x13   : > { %p48_p0 = scmp.ge.s32.totalorder %s46_s27, 2  ;;  %p471_p1 = scmp.ne.s32.totalorder %s1950_s23, %s1946_s22 }
  0x14   : > { %p472_p2 = scmp.eq.s32.totalorder %s1654_s3, 1  ;;  %p477_p3 = scmp.ne.s32.totalorder %s1946_s22, %s1942_s1 }
  0x15   : > { %s2385_s27 = smov (%p48_p0, %s46_s27), 0  ;;  %p478_p5 = scmp.eq.s32.totalorder %s1655_s26, 1 }
  0x16   : > { %2358 = sst [smem:[#allocation9_spill]] %s2385_s27  ;;  %p2114_p4 = por %p472_p2, %p471_p1 }
  0x17   : > { %s456_s29 = ssub.s32 %s1958_s2, %s2385_s27  ;;  %p1658_p6 = scmp.ge.s32.totalorder %s1962_s25, 1 }
  0x18   : > { %p459_p7 = scmp.eq.s32.totalorder %s456_s29, 0  ;;  %p2121_p8 = por %p478_p5, %p477_p3 }
  0x19   : > { %p589_p9 = scmp.lt.s32.totalorder %s1962_s25, 3 }
  0x1a   : > { %s2360_s30 = scalar_select %p2121_p8, 1, 0 }
  0x1b   : > { %s2127_s0 = scalar_select %p459_p7, %s1950_s23, %s461_s28  }
  0x1c   : > { %2361 = sst [smem:[#allocation10_spill]] %s2360_s30  ;;  %p590_p10 = pnand %p1658_p6, %p589_p9 }
  0x1d   : > { %2362 = sst [smem:[#allocation11_spill]] %s2127_s0  ;;  %p658_p11 = scmp.lt.s32.totalorder (!%p590_p10), %s1954_s24, 1  ;;  %vm690_vm0 = vcmask (!%p590_p10), 130048   ;;  %v1964_v2 = vmov (!%p590_p10), 0   ;;  %v938_v7 = vld [vmem:[%s2320_s8] sm:$0xf] (!%p590_p10) }
  0x1e   : > { %593 = sbr.rel (%p590_p10) target bundleno = 2094 (0x82e), region = 96  ;;  %s2363_s1 = sld [smem:[#allocation13_spill]] (!%p590_p10)  ;;  %1856 = vset.pattern.permute.xlu0 (!%p590_p10), %v1964_v2  ;;  %1857 = vset.pattern.permute.xlu1 (!%p590_p10), %v1964_v2  ;;  %v1111_v9 = vld [vmem:[%s2324_s12] sm:$0xff] (!%p590_p10)  ;;  %v1197_v10 = vld [vmem:[%s2326_s14 + $0x8] sm:$0xff] (!%p590_p10)  ;;  %v1298_v12 = vld [vmem:[%s2328_s16 + $0x18] sm:$0xff] (!%p590_p10)  ;;  %v1965_v14 = vmov (!%p590_p10), 0.0|0.0  }
  0x1f   : > { %s2365_s29 = sld [smem:[#allocation14_spill]] (!%p590_p10)  ;;  %s2366_s27 = sld [smem:[#allocation12_spill]] (!%p590_p10)  ;;  %v1296_v11 = vld [vmem:[%s2328_s16 + $0x8] sm:$0xff] (!%p590_p10)  ;;  %1782 = vmatprep.subr.bf16.mxu1 (!%p590_p10), %v1965_v14  ;;  %vm1966_vm1 = vmmov (!%p590_p10), 0   ;;  %v1967_v15 = vmov (!%p590_p10), 0.0   ;;  %v1196_v19 = vld [vmem:[%s2326_s14] sm:$0xff] (!%p590_p10) }
  0x20   : > { %v1423_v13 = vld [vmem:[%s2330_s18 + $0x8] sm:$0xff] (!%p590_p10)  ;;  %1729 = vmatprep.mubr.msk.f32.mxu1 (!%p590_p10), %vm1966_vm1, %v1967_v15  ;;  %s2367_s21 = sld [smem:[#allocation16_spill]] (!%p590_p10)  ;;  %s2368_s6 = sld [smem:[#allocation18_spill]] (!%p590_p10)  ;;  %v1025_v18 = vld [vmem:[%s2322_s10] sm:$0x1f] (!%p590_p10)  ;;  %v1297_v21 = vld [vmem:[%s2328_s16 + $0x10] sm:$0xff] (!%p590_p10) }
  0x21   : > { %v1295_v20 = vld [vmem:[%s2328_s16] sm:$0xff] (!%p590_p10)  ;;  %s2369_s30 = sld [smem:[#allocation15_spill]] (!%p590_p10)  ;;  %s2370_s5 = sld [smem:[#allocation17_spill]] (!%p590_p10)  ;;  %vm862_vm2 = vcmask (!%p590_p10), 64512   ;;  %vm948_vm3 = vcmask (!%p590_p10), 1044480   ;;  %vm944_vm4 = vcmask (!%p590_p10), 39936  }
  0x22   : > { %v1422_v22 = vld [vmem:[%s2330_s18] sm:$0xff] (!%p590_p10)  ;;  %s2371_s7 = sld [smem:[#allocation19_spill]] (!%p590_p10)  ;;  %s645_s2 = sand.u32 (!%p590_p10), 1, %s1946_s22   ;;  %vm1035_vm5 = vcmask (!%p590_p10), 1043456   ;;  %vm1031_vm6 = vcmask (!%p590_p10), 31744   ;;  %v1195_v63 = vld [vmem:[%s2325_s13 + $0x8] sm:$0xff] (!%p590_p10) }
  0x23   : > { %s2213_s0 = sshll.u32 (!%p590_p10), %s645_s2, 2  ;;  %v1024_v49 = vld [vmem:[%s2321_s9] sm:$0x1f] (!%p590_p10)  ;;  %vm1434_vm7 = vcmask (!%p590_p10), 261120   ;;  %s1683_s19 = sshll.u32 (!%p590_p10), %s1954_s24, 6 }
  0x24   : > { %s2364_s20 = smov (!%p590_p10), %s2363_s1  ;;  %v676_v0 = vld [vmem:[%s2363_s1] sm:$0xff] (!%p590_p10)  ;;  %s1968_s23 = smov (!%p590_p10), [#allocation2]  }
  0x25   : > { %v678_v1 = vld [vmem:[%s2365_s29] sm:$0xff]  ;;  %1722 = vmatprep.mubr.msk.f32.mxu0 %vm690_vm0, %v676_v0  ;;  %s2138_s28 = scalar_select %p658_p11, %s1954_s24, 1  ;;  %v679_v3 = vld [vmem:[%s2365_s29 + $0x8] sm:$0xff] }
  0x26   : > { %682 = vperm.xlu0 %1856, %v678_v1   ;;  %v677_v8 = vld [vmem:[%s2364_s20 + $0x8] sm:$0xff]  ;;  %v775_v16 = vld [vmem:[%s2367_s21] sm:$0xff]  ;;  %s2372_s21 = sld [smem:[#allocation20_spill]] }
  0x27   : > { %s2343_s1 = sshll.u32 %s2138_s28, 4  ;;  %778 = vperm.xlu1 %1857, %v775_v16   ;;  %v856_v17 = vld [vmem:[%s2368_s6] sm:$0x1f] }
  0x28   : > { %s665_s26 = scalar_lea.vmem %s2366_s27, %s2343_s1  ;;  %v774_v32 = vld [vmem:[%s2369_s30] sm:$0xff]  ;;  %s647_s1 = scalar_lea.vmem [#allocation2], %s2213_s0 }
  0x29   : > { %v674_v4 = vld [vmem:[%s665_s26] sm:$0xff]  ;;  %v675_v5 = vld [vmem:[%s665_s26 + $0x8] sm:$0xff]  ;;  %s1541_s25 = sshll.u32 %s647_s1, 4  ;;  %s1888_s30 = sshll.u32 %s1968_s23, 4  ;;  %s1542_s25 = int_to_ptr.vmem [resolvable:$true] %s1541_s25  ;;  %s1889_s30 = int_to_ptr.vmem [resolvable:$false] %s1888_s30 }
  0x2a   : > { %687 = vperm.xlu0 %1856, %v679_v3   ;;  %v1778_v6 = vpack.c.bf16 %v675_v5, %v674_v4  ;;  %v855_v37 = vld [vmem:[%s2370_s5] sm:$0x1f]  ;;  %s1519_s5 = scalar_lea.sflag [#allocation3], %s645_s2  ;;  %s1884_s6 = scalar_lea.vmem %s1542_s25, 64 }
  0x2b   : > { %859 = vperm.xlu1 %1857, %v856_v17   ;;  %v937_v43 = vld [vmem:[%s2371_s7] sm:$0xf]  ;;  %p1885_p12 = scmp.ne.s32.totalorder %s1542_s25, %s1884_s6  ;;  %s1890_s7 = scalar_lea.vmem %s1889_s30, 128 }
  0x2c   : > { %1779 = vmatprep.subr.bf16.mxu0 %v1778_v6  ;;  %v1110_v55 = vld [vmem:[%s2323_s11] sm:$0xff]  ;;  %s2264_s3 = scalar_lea.hbm %s2372_s21, %s1683_s19  ;;  %p1891_p1 = scmp.lt.s32.totalorder %s1542_s25, %s1889_s30 }
  0x2d   : > { %1781 = vmatpush3.bf16.msra.mxu0 %v1778_v6  ;;  %v1194_v57 = vld [vmem:[%s2325_s13] sm:$0xff]  ;;  %p1886_p13 = pnand %p1885_p12, %p2114_p4  ;;  %p1892_p2 = scmp.lt.s32.totalorder %s1890_s7, %s1884_s6 }
  0x2e   : > { %941 = vperm.xlu0 %1856, %v938_v7   ;;  %1732 = vmatprep.subr.mxu0 %v1967_v15  ;;  %v1291_v0 = vld [vmem:[%s2327_s15] sm:$0xff] }
  0x2f   : > { %1028 = vperm.xlu1 %1857, %v1025_v18   ;;  %p1887_p0 = pneg %p1886_p13  ;;  %p1893_p3 = por %p1892_p2, %p1891_p1 }
  0x30   : > { %1723 = vmatmul.mubr.msk.f32.vlgmr.msra.gmra.mrb[0].mxu0 %vm690_vm0, %v677_v8 }
  0x31   : > { %1734 = vmatprep.mubr.msk.f32.mxu0 %vm1966_vm1, %v1967_v15  ;;  %p1894_p5 = pnand %p1893_p3, %p1887_p0 }
  0x32   : > { %1114 = vperm.xlu0 %1856, %v1111_v9  }
  0x33   : > { %1200 = vperm.xlu1 %1857, %v1196_v19  }
  0x36   : > { %1205 = vperm.xlu0 %1856, %v1197_v10   ;;  %v1292_v10 = vld [vmem:[%s2327_s15 + $0x8] sm:$0xff] }
  0x37   : > { %1301 = vperm.xlu1 %1857, %v1295_v20  }
  0x3a   : > { %1306 = vperm.xlu0 %1856, %v1296_v11   ;;  %v1293_v11 = vld [vmem:[%s2327_s15 + $0x10] sm:$0xff] }
  0x3b   : > { %1311 = vperm.xlu1 %1857, %v1297_v21  }
  0x3e   : > { %1316 = vperm.xlu0 %1856, %v1298_v12   ;;  %v1294_v12 = vld [vmem:[%s2327_s15 + $0x18] sm:$0xff] }
  0x3f   : > { %1426 = vperm.xlu1 %1857, %v1422_v22  }
  0x42   : > { %1431 = vperm.xlu0 %1856, %v1423_v13   ;;  %v1420_v13 = vld [vmem:[%s2329_s17] sm:$0xff] }
  0xa5   : > { %v683_v23 = vpop.permute.xlu0 %682 }
  0xa6   : > { %v779_v33 = vpop.permute.xlu1 %778 }
  0xa9   : > { %v688_v24 = vpop.permute.xlu0 %687 }
  0xaa   : > { %v860_v39 = vpop.permute.xlu1 %859 }
  0xad   : > { %v942_v45 = vpop.permute.xlu0 %941 }
  0xae   : > { %v1029_v51 = vpop.permute.xlu1 %1028 }
  0xb1   : > { %v1115_v58 = vpop.permute.xlu0 %1114 }
  0xb2   : > { %v1201_v3 = vpop.permute.xlu1 %1200 }
  0xb5   : > { %v1206_v1 = vpop.permute.xlu0 %1205 }
  0xb9   : > { %v1307_v14 = vpop.permute.xlu0 %1306 }
  0xbd   : > { %v1317_v20 = vpop.permute.xlu0 %1316 }
 0x103   : > { %v1724_v25 = vpop.f32.mrb[0].mxu0 }
 0x104   : > { %v769_v26 = vadd.f32 %v1724_v25, %v688_v24  ;;  %v763_v27 = vpop.f32.mrb[1].mxu0 }
 0x105   : > { %v764_v28 = vadd.f32 %v763_v27, %v683_v23 }
 0x106   : > { %1858 = vtanh.f32 %v769_v26 }
 0x107   : > { %1860 = vtanh.f32 %v764_v28 }
 0x110   : > { %v1859_v29 = vpop.eup %1858 }
 0x111   : > { %v1861_v30 = vpop.eup %1860 }
 0x112   : > { %v1783_v31 = vpack.c.bf16 %v1859_v29, %v1861_v30 }
 0x114   : > { %1784 = vmatpush3.bf16.msra.mxu1 %v1783_v31 }
 0x115   : > { %1737 = vmatprep.subr.mxu1 %v1967_v15 }
 0x117   : > { %1730 = vmatmul.mubr.msk.f32.vlgmr.msra.gmra.mrb[0].mxu1 %vm690_vm0, %v774_v32  ;;  %v1421_v32 = vld [vmem:[%s2329_s17 + $0x8] sm:$0xff] }
 0x118   : > { %1739 = vmatprep.mubr.msk.f32.mxu1 %vm1966_vm1, %v1967_v15 }
 0x1ea   : > { %v850_v34 = vpop.f32.mrb[0].mxu1 }
 0x1eb   : > { %v851_v35 = vadd.f32 %v850_v34, %v779_v33  ;;  %v1731_v36 = vpop.f32.mrb[1].mxu1 }
 0x1ed   : > { %1862 = vtanh.f32 %v851_v35 }
 0x1f7   : > { %v1863_v38 = vpop.eup %1862 }
 0x1f8   : > { %1733 = vmatpush3.msra.mxu0 %v1863_v38 }
 0x1f9   : > { %1735 = vmatmul.mubr.msk.f32.vlgmr.msra.gmra.mrb[2].mxu0 %vm862_vm2, %v855_v37  ;;  %1742 = vmatprep.subr.mxu0 %v1967_v15 }
 0x1fa   : > { %1744 = vmatprep.mubr.msk.f32.mxu0 %vm1966_vm1, %v1967_v15 }
 0x2cc   : > { %v932_v40 = vpop.f32.mrb[2].mxu0 }
 0x2cd   : > { %v933_v41 = vadd.f32 %v932_v40, %v860_v39  ;;  %v1736_v42 = vpop.f32.mrb[3].mxu0 }
 0x2cf   : > { %1864 = vtanh.f32 %v933_v41 }
 0x2d9   : > { %v1865_v44 = vpop.eup %1864 }
 0x2da   : > { %1738 = vmatpush3.msk.msra.mxu1 %vm948_vm3, %v1865_v44 }
 0x2db   : > { %1740 = vmatmul.mubr.msk.f32.vlgmr.msra.gmra.mrb[2].mxu1 %vm944_vm4, %v937_v43  ;;  %1747 = vmatprep.subr.mxu1 %v1967_v15 }
 0x2dc   : > { %1749 = vmatprep.mubr.msk.f32.mxu1 %vm1966_vm1, %v1967_v15  ;;  %v1302_v15 = vpop.permute.xlu1 %1301 }
 0x2e0   : > { %v1312_v22 = vpop.permute.xlu1 %1311 }
 0x3ae   : > { %v1018_v46 = vpop.f32.mrb[2].mxu1 }
 0x3af   : > { %v1019_v47 = vadd.f32 %v1018_v46, %v942_v45  ;;  %v1741_v48 = vpop.f32.mrb[3].mxu1 }
 0x3b1   : > { %1866 = vtanh.f32 %v1019_v47 }
 0x3bb   : > { %v1867_v50 = vpop.eup %1866 }
 0x3bc   : > { %1743 = vmatpush3.msk.msra.mxu0 %vm1035_vm5, %v1867_v50  ;;  %1023 = vst [vmem:[%s647_s1] sm:$0xf] %v1867_v50 }
 0x3bd   : > { %1745 = vmatmul.mubr.msk.f32.vlgmr.msra.gmra.mrb[4].mxu0 %vm1031_vm6, %v1024_v49 }
 0x3be   : > { %1754 = vmatprep.mubr.msk.f32.mxu0 %vm862_vm2, %v1194_v57 }
 0x490   : > { %v1105_v52 = vpop.f32.mrb[4].mxu0 }
 0x491   : > { %v1106_v53 = vadd.f32 %v1105_v52, %v1029_v51  ;;  %v1746_v54 = vpop.f32.mrb[5].mxu0 }
 0x493   : > { %1868 = vtanh.f32 %v1106_v53 }
 0x49d   : > { %v1869_v56 = vpop.eup %1868 }
 0x49e   : > { %1748 = vmatpush3.msk.msra.mxu1 %vm948_vm3, %v1869_v56 }
 0x49f   : > { %1750 = vmatmul.mubr.msk.f32.vlgmr.msra.gmra.mrb[4].mxu1 %vm944_vm4, %v1110_v55 }
 0x4a0   : > { %1761 = vmatprep.mubr.msk.f32.mxu1 %vm690_vm0, %v1291_v0 }
 0x572   : > { %v1189_v59 = vpop.f32.mrb[4].mxu1 }
 0x573   : > { %v1190_v60 = vadd.f32 %v1189_v59, %v1115_v58  ;;  %v1751_v61 = vpop.f32.mrb[5].mxu1 }
 0x575   : > { %1870 = vtanh.f32 %v1190_v60 }
 0x57f   : > { %v1871_v62 = vpop.eup %1870 }
 0x580   : > { %1752 = vmatprep.subr.mxu0 %v1871_v62 }
 0x581   : > { %1753 = vmatpush3.msra.mxu0 %v1871_v62 }
 0x582   : > { %1755 = vmatmul.mubr.msk.f32.vlgmr.msra.gmra.mrb[6].mxu0 %vm862_vm2, %v1195_v63 }
 0x583   : > { %1775 = vmatprep.mubr.msk.f32.mxu0 %vm1434_vm7, %v1420_v13 }
 0x655   : > { %v1756_v2 = vpop.f32.mrb[6].mxu0 }
 0x656   : > { %v1286_v4 = vadd.f32 %v1756_v2, %v1206_v1  ;;  %v1280_v5 = vpop.f32.mrb[7].mxu0 }
 0x657   : > { %v1281_v6 = vadd.f32 %v1280_v5, %v1201_v3 }
 0x658   : > { %1872 = vtanh.f32 %v1286_v4 }
 0x659   : > { %1874 = vtanh.f32 %v1281_v6 }
 0x662   : > { %v1873_v7 = vpop.eup %1872 }
 0x663   : > { %v1875_v8 = vpop.eup %1874 }
 0x664   : > { %v1785_v9 = vpack.c.bf16 %v1873_v7, %v1875_v8 }
 0x666   : > { %1786 = vmatprep.subr.bf16.mxu1 %v1785_v9 }
 0x667   : > { %1788 = vmatpush3.bf16.msra.mxu1 %v1785_v9 }
 0x66a   : > { %1762 = vmatmul.mubr.msk.f32.vlgmr.msra.gmra.mrb[6].mxu1 %vm690_vm0, %v1292_v10 }
 0x66b   : > { %1764 = vmatprep.mubr.msk.f32.mxu1 %vm690_vm0, %v1293_v11 }
 0x66e   : > { %1765 = vmatmul.mubr.msk.f32.gmra.mrb[8].mxu1 %vm690_vm0, %v1294_v12 }
 0x73d   : > { %v1763_v16 = vpop.f32.mrb[6].mxu1 }
 0x73e   : > { %v1403_v17 = vadd.f32 %v1763_v16, %v1307_v14  ;;  %v1397_v18 = vpop.f32.mrb[7].mxu1 }
 0x73f   : > { %v1398_v19 = vadd.f32 %v1397_v18, %v1302_v15 }
 0x740   : > { %1876 = vtanh.f32 %v1403_v17 }
 0x741   : > { %1878 = vtanh.f32 %v1398_v19  ;;  %v1766_v21 = vpop.f32.mrb[8].mxu1 }
 0x742   : > { %v1413_v23 = vadd.f32 %v1766_v21, %v1317_v20  ;;  %v1407_v24 = vpop.f32.mrb[9].mxu1 }
 0x743   : > { %v1408_v25 = vadd.f32 %v1407_v24, %v1312_v22 }
 0x744   : > { %1880 = vtanh.f32 %v1413_v23 }
 0x745   : > { %1882 = vtanh.f32 %v1408_v25 }
 0x74a   : > { %v1877_v26 = vpop.eup %1876 }
 0x74b   : > { %v1879_v27 = vpop.eup %1878 }
 0x74c   : > { %v1789_v28 = vpack.c.bf16 %v1877_v26, %v1879_v27 }
 0x74e   : > { %v1881_v29 = vpop.eup %1880  ;;  %1790 = vmatprep.subr.bf16.mxu0 %v1789_v28 }
 0x74f   : > { %v1883_v30 = vpop.eup %1882  ;;  %1792 = vmatpush3.bf16.msra.mxu0 %v1789_v28 }
 0x750   : > { %v1793_v31 = vpack.c.bf16 %v1881_v29, %v1883_v30 }
 0x752   : > { %1794 = vmatprep.subr.bf16.mxu0 %v1793_v31 }
 0x753   : > { %1796 = vmatpush3.bf16.msra.mxu0 %v1793_v31 }
 0x756   : > { %1776 = vmatmul.mubr.msk.f32.vlgmr.msra.gmra.mrb[8].mxu0 %vm1434_vm7, %v1421_v32 }
 0x757   : > { %1897 = shalt.err (!%p1894_p5)
}
 0x758   : > { %s1898_s24 = scalar_lea.hbm %s2264_s3, 64  ;;  %s1902_s1 = scalar_lea.hbm %s2372_s21, 128 }
 0x759   : > { %p1899_p6 = scmp.ne.s32.totalorder %s2264_s3, %s1898_s24  ;;  %p1903_p10 = scmp.lt.u32.totalorder %s2264_s3, %s2372_s21 }
 0x75a   : > { %p1904_p11 = scmp.lt.u32.totalorder %s1902_s1, %s1898_s24  ;;  %p1906_p13 = scmp.lt.u32.totalorder %s1898_s24, %s2264_s3 }
 0x75b   : > { %p1900_p7 = pnand %p1899_p6, %p2114_p4 }
 0x75c   : > { %p1905_p12 = por %p1904_p11, %p1903_p10 }
 0x75d   : > { %p1901_p9 = pneg %p1900_p7 }
 0x75e   : > { %p1907_p0 = por %p1906_p13, %p1905_p12 }
 0x760   : > { %p1908_p1 = pnand %p1907_p0, %p1901_p9 }
 0x762   : > { %1911 = shalt.err (!%p1908_p1)
}
 0x763   : > { %1797 = dma.vmem_to_hbm [thread:$0]  (%p2114_p4), %s1542_s25, 64, %s2264_s3, %s1519_s5   ;;  %v1432_v33 = vpop.permute.xlu0 %1431  ;;  %v1427_v35 = vpop.permute.xlu1 %1426 }
 0x764   : > { %s2373_s6 = sshll.u32 %s2138_s28, 4  ;;  %s2374_s23 = sld [smem:[#allocation21_spill]] }
 0x76a   : > { %s673_s30 = scalar_lea.vmem %s2374_s23, %s2373_s6 }
 0x829   : > { %v1777_v34 = vpop.f32.mrb[8].mxu0 }
 0x82a   : > { %v1513_v36 = vadd.f32 %v1777_v34, %v1432_v33  ;;  %v1507_v37 = vpop.f32.mrb[9].mxu0 }
 0x82b   : > { %v1508_v38 = vadd.f32 %v1507_v37, %v1427_v35 }
 0x82c   : > { %1517 = vst [vmem:[%s673_s30 + $0x8] sm:$0xff] %v1513_v36 }
 0x82d   : > { %1516 = vst [vmem:[%s673_s30] sm:$0xff] %v1508_v38 }
 0x82e PF: > { %s2375_s24 = sld [smem:[#allocation8_spill]]  ;;  %s2376_s2 = sld [smem:[#allocation5_spill]] }
 0x834   : > { %p1803_p2 = scmp.ge.s32.totalorder %s2375_s24, 2  ;;  %s1556_s0 = sand.u32 1, %s2376_s2  }
 0x835   : > { %s1557_s5 = scalar_lea.sflag [#allocation3], %s1556_s0 }
 0x836   : > { %p1800_p4 = pnand %p1803_p2, %p2121_p8 }
 0x838   : > { %1937 = dma.done.wait (!%p1800_p4), %s1557_s5, 64  }
 0x839   : > { %1939 = vsyncadd (!%p1800_p4), %s1557_s5, 4294967232  ;;  %s34_s25 = sadd.s32 1, %s2375_s24   ;;  %s2378_s28 = sld [smem:[#allocation6_spill]] }
 0x83a   : > { %p31_p3 = scmp.ge.s32.totalorder %s34_s25, 4   ;;  %s2379_s23 = sld [smem:[#allocation11_spill]] }
 0x83b   : > { %s2380_s24 = sld [smem:[#allocation7_spill]]  ;;  %s2381_s2 = sld [smem:[#allocation9_spill]] }
 0x83c   : > { %s2382_s1 = smov %s1946_s22  ;;  %33 = sbr.rel (!%p31_p3) target bundleno = 15 (0xf), region = 143 }
 0x83f   : > { %s2383_s22 = smov %s2378_s28 }
 0x843   :  { %1573 = vsyncpa [#allocation3], 1 }
 0x844   :  { %1575 = vsyncpa [#allocation3 + $0x1], 1 }

</bundles_post_ra>
